<compile_context>
chip_gen: v7x
topology: tpu7x:2x2x1
jax: 0.10.0
libtpu: 0.0.40
codegen_flags: <defaults>
</compile_context>

<pallas_src>
import math

import jax
import jax.numpy as jnp
from jax.experimental import pallas as pl
from jax.experimental.pallas import tpu as pltpu


def _argmax_axis1_kernel(x_ref, o_ref):
    """x_ref: (To, R, Ti)  ->  o_ref: (To, Ti) = argmax over axis 1 (int32)."""
    x = x_ref[...]
    r = x.shape[1]
    mx = jnp.max(x, axis=1, keepdims=True)                       # (To, 1, Ti)
    idx = jax.lax.broadcasted_iota(jnp.int32, x.shape, 1)        # (To, R, Ti)
    # First occurrence of the max: replace non-max positions with sentinel R,
    # then take the min index along the reduction axis.
    cand = jnp.where(x == mx, idx, jnp.int32(r))
    o_ref[...] = jnp.min(cand, axis=1).astype(o_ref.dtype)


def _pick_inner_tile(inner, r, itemsize, max_block_bytes=2 << 20):
    """Lane tile: full `inner` if small enough, else a multiple of 128."""
    if inner * r * itemsize <= max_block_bytes and inner <= 2048:
        return inner
    if inner < 128:
        return inner  # full extent (only legal non-multiple-of-128 choice)
    ti = min(1024, (inner // 128) * 128)
    while ti > 128 and ti * r * itemsize > max_block_bytes:
        ti -= 128
    return max(ti, 128)


def argmax_layer_pallas(x, dimA):
    """Equivalent of torch.max(x, dim=dimA).indices (indices as int32)."""
    ndim = x.ndim
    dim = dimA % ndim  # normalize negative dims like PyTorch

    r = x.shape[dim]
    out_shape = x.shape[:dim] + x.shape[dim + 1:]
    outer = math.prod(x.shape[:dim]) if dim > 0 else 1
    inner = math.prod(x.shape[dim + 1:]) if dim < ndim - 1 else 1

    # Metadata-only reshape (row-major contiguous): no HBM traffic.
    x3 = x.reshape(outer, r, inner)
    itemsize = x.dtype.itemsize

    max_block_bytes = 2 << 20  # ~2 MiB per input block (safe on v5e/v6e/v7x)
    ti = _pick_inner_tile(inner, r, itemsize, max_block_bytes)
    to = min(outer, max(1, max_block_bytes // max(1, r * ti * itemsize)), 256)
    if to < outer:
        # Output block is (to, ti): keep its second-to-last dim a multiple of 8
        # (or equal to the full extent) to satisfy the (8, 128) tiling rule.
        to = min(outer, max(8, (to // 8) * 8))

    grid = (pl.cdiv(outer, to), pl.cdiv(inner, ti))

    out2 = pl.pallas_call(
        _argmax_axis1_kernel,
        out_shape=jax.ShapeDtypeStruct((outer, inner), jnp.int32),
        grid=grid,
        in_specs=[pl.BlockSpec((to, r, ti), lambda i, j: (i, 0, j))],
        out_specs=pl.BlockSpec((to, ti), lambda i, j: (i, j)),
        compiler_params=pltpu.CompilerParams(
            dimension_semantics=("parallel", "parallel"),
            vmem_limit_bytes=32 * 1024 * 1024,
        ),
        cost_estimate=pl.CostEstimate(
            flops=2 * outer * r * inner,          # compares + selects
            transcendentals=0,
            bytes_accessed=x.size * itemsize + outer * inner * 4,
        ),
    )(x3)

    return out2.reshape(out_shape)


if __name__ == "__main__":
    key = jax.random.PRNGKey(0)

    # Module config: argmax_layer(dimA=1); e.g. NCHW input, argmax over channels.
    dimA = 1
    B, C, H, W = 2, 4, 16, 16
    x = jax.random.normal(key, (B, C, H, W), dtype=jnp.float32)

    out = jax.block_until_ready(argmax_layer_pallas(x, dimA))
    ref = jnp.argmax(x, axis=dimA)
    assert out.shape == ref.shape, (out.shape, ref.shape)
    assert bool(jnp.array_equal(out.astype(jnp.int32), ref.astype(jnp.int32)))

    # Also exercise a last-axis reduction (negative dim) for parity with PyTorch.
    y = jax.random.normal(jax.random.PRNGKey(1), (2, 4, 8, 128), jnp.float32)
    out2 = jax.block_until_ready(argmax_layer_pallas(y, -1))
    ref2 = jnp.argmax(y, axis=-1)
    assert out2.shape == ref2.shape, (out2.shape, ref2.shape)
    assert bool(jnp.array_equal(out2.astype(jnp.int32), ref2.astype(jnp.int32)))

    print("KERNEL_OK")
</pallas_src>

<mosaic_0001>
module attributes {stable_mosaic.version = 11 : i64} {
  func.func @_argmax_axis1_kernel(%arg0: i32, %arg1: i32, %arg2: memref<2x4x256xf32, #tpu.memory_space<vmem>>, %arg3: memref<2x256xi32, #tpu.memory_space<vmem>>) attributes {dimension_semantics = [#tpu.dimension_semantics<parallel>, #tpu.dimension_semantics<parallel>], iteration_bounds = array<i64: 1, 1>, scalar_prefetch = 0 : i64, scratch_operands = 0 : i64, tpu.core_type = #tpu.core_type<tc>, window_params = [{transform_indices = @transform_0, window_bounds = array<i64: 2, 4, 256>}, {transform_indices = @transform_1, window_bounds = array<i64: 2, 256>}]} {
    %c0 = arith.constant 0 : index
    %c0_0 = arith.constant 0 : index
    %c0_1 = arith.constant 0 : index
    %0 = vector.load %arg2[%c0, %c0_0, %c0_1] : memref<2x4x256xf32, #tpu.memory_space<vmem>>, vector<2x4x256xf32>
    %cst = arith.constant dense<0xFF800000> : vector<2x256xf32>
    %1 = vector.multi_reduction <maximumf>, %0, %cst [1] : vector<2x4x256xf32> to vector<2x256xf32>
    %2 = vector.shape_cast %1 : vector<2x256xf32> to vector<2x1x256xf32>
    %3 = tpu.iota {dimensions = array<i32: 1>} : vector<2x4x256xi32>
    %4 = vector.broadcast %2 : vector<2x1x256xf32> to vector<2x4x256xf32>
    %5 = arith.cmpf oeq, %0, %4 : vector<2x4x256xf32>
    %c4_i32 = arith.constant 4 : i32
    %6 = vector.broadcast %c4_i32 : i32 to vector<2x4x256xi32>
    %7 = arith.select %5, %3, %6 : vector<2x4x256xi1>, vector<2x4x256xi32>
    %cst_2 = arith.constant dense<2147483647> : vector<2x256xi32>
    %8 = vector.multi_reduction <minsi>, %7, %cst_2 [1] : vector<2x4x256xi32> to vector<2x256xi32>
    %c0_3 = arith.constant 0 : index
    %c0_4 = arith.constant 0 : index
    %9 = vector.load %arg3[%c0_3, %c0_4] : memref<2x256xi32, #tpu.memory_space<vmem>>, vector<2x256xi32>
    tpu.vector_store %arg3[%c0_3, %c0_4], %8 {strides = array<i32>} : memref<2x256xi32, #tpu.memory_space<vmem>>, vector<2x256xi32>,
    return
  }
  func.func @transform_0(%arg0: i32, %arg1: i32) -> (i32, i32, i32) {
    %c0_i32 = arith.constant 0 : i32
    %c0_i32_0 = arith.constant 0 : i32
    return %arg0, %c0_i32, %arg1 : i32, i32, i32
  }
  func.func @transform_1(%arg0: i32, %arg1: i32) -> (i32, i32) {
    %c0_i32 = arith.constant 0 : i32
    return %arg0, %arg1 : i32, i32
  }
}

</mosaic_0001>

<bundles_post_ra>
// kernel: tpu_custom_call.1
= control target key start
LH: loop header
LB: loop body
LE: loop exit
PB: predicated region body
PF: predicated region fallthrough
CT: control target
= control target key end

     0   :  { %6 = vsyncpa [#allocation3], 0  ;;  %s277_s0 = inlined_call_operand.hbm [shape: f32[2,4,256], index: 0, kind: input, shape index: {}]   ;;  %s278_s1 = inlined_call_operand.hbm [shape: s32[2,256], index: 1, kind: output, shape index: {}]  }
   0x1   :  { %7 = vsyncpa [#allocation4], 0  ;;  %s224_s6 = smov [#allocation2]   ;;  %s176_s10 = scalar_lea.hbm %s277_s0, 256 }
   0x2   :  { %s13_s7 = sshll.u32 %s224_s6, 4  ;;  %p177_p0 = scmp.ne.s32.totalorder %s277_s0, %s176_s10  ;;  %s14_s7 = int_to_ptr.vmem [resolvable:$true] %s13_s7 }
   0x3   :  { %p180_p1 = scmp.lt.u32.totalorder %s176_s10, %s277_s0 }
   0x5   :  { %p182_p2 = pnand %p180_p1, %p177_p0 }
   0x7   :  { %185 = shalt.err (!%p182_p2)
}
   0x8   :  { %s186_s15 = scalar_lea.vmem %s14_s7, 256  ;;  %p191_p4 = scmp.lt.s32.totalorder %s14_s7, %s14_s7 }
   0x9   :  { %p187_p3 = scmp.ne.s32.totalorder %s14_s7, %s186_s15  ;;  %p192_p5 = scmp.lt.s32.totalorder %s186_s15, %s186_s15 }
   0xb   :  { %p193_p6 = por %p192_p5, %p191_p4 }
   0xd   :  { %p194_p7 = pnand %p193_p6, %p187_p3 }
   0xf   :  { %197 = shalt.err (!%p194_p7)
}
  0x10   :  { %s225_s16 = smov 128   ;;  %s226_s17 = smov 8  }
  0x11   :  { %19 = dma.hbm_to_vmem [thread:$0]  %s277_s0, 256, %s14_s7, [#allocation3], %s225_s16, %s225_s16, %s226_s17  }
  0x12   :  { %220 = dma.done.wait [#allocation3], 256  }
  0x13   :  { %221 = vsyncadd [#allocation3], 4294967040  ;;  %vm31_vm0 = vcmask 1043456   ;;  %v23_v0 = vld [vmem:[#allocation2] sm:$0xff]  ;;  %v24_v1 = vld [vmem:[#allocation2 + $0x8] sm:$0xff]  ;;  %v60_v10 = vlaneseq  ;;  %vm144_vm15 = vcmask 1041409  }
  0x14   :  { %v27_v2 = vcombine.high %v23_v0, %v23_v0  ;;  %v28_v3 = vcombine.high %v24_v1, %v24_v1  ;;  %v32_v4 = vsel %vm31_vm0, %v23_v0, -inf  ;;  %v46_v5 = vsel %vm31_vm0, %v24_v1, -inf  ;;  %s229_s0 = smov [#allocation5]  }
  0x15   :  { %v33_v6 = vrot.slane %v32_v4, 4  ;;  %v47_v7 = vrot.slane %v46_v5, 4  ;;  %v227_v11 = vmov 839922192   ;;  %v256_v21 = vshrl.u32 %v60_v10, 7  ;;  %s159_s20 = sshll.u32 %s229_s0, 4  ;;  %s160_s20 = int_to_ptr.vmem [resolvable:$true] %s159_s20 }
  0x16   :  { %v39_v8 = vsel %vm31_vm0, %v27_v2, -inf  ;;  %v53_v9 = vsel %vm31_vm0, %v28_v3, -inf  ;;  %v73_v12 = vunpack.c.l.s4 %v227_v11  ;;  %v228_v55 = vmov 1983009808   ;;  %s198_s21 = scalar_lea.vmem %s160_s20, 64  ;;  %p203_p9 = scmp.lt.s32.totalorder %s160_s20, %s160_s20 }
  0x17   :  { %v34_v13 = vmax.f32 %v32_v4, %v33_v6  ;;  %v40_v14 = vrot.slane %v39_v8, 4  ;;  %v48_v15 = vmax.f32 %v46_v5, %v47_v7  ;;  %v54_v16 = vrot.slane %v53_v9, 4  ;;  %p199_p8 = scmp.ne.s32.totalorder %s160_s20, %s198_s21  ;;  %p204_p10 = scmp.lt.s32.totalorder %s198_s21, %s198_s21 }
  0x18   :  { %v74_v22 = vunpack.c.0.s8 %v73_v12  ;;  %v125_v56 = vunpack.c.l.s4 %v228_v55 }
  0x19   :  { %v35_v17 = vrot.slane %v34_v13, 2  ;;  %v41_v18 = vmax.f32 %v39_v8, %v40_v14  ;;  %v49_v19 = vrot.slane %v48_v15, 2  ;;  %v55_v20 = vmax.f32 %v53_v9, %v54_v16  ;;  %p205_p11 = por %p204_p10, %p203_p9 }
  0x1a   :  { %v77_v31 = vsub.s32 %v74_v22, %v256_v21 }
  0x1b   :  { %v36_v23 = vmax.f32 %v34_v13, %v35_v17  ;;  %v42_v24 = vrot.slane %v41_v18, 2  ;;  %v50_v25 = vmax.f32 %v48_v15, %v49_v19  ;;  %v56_v26 = vrot.slane %v55_v20, 2  ;;  %p206_p12 = pnand %p205_p11, %p199_p8 }
  0x1c   :  { %v78_v38 = vrot.slane %v256_v21, %v77_v31 }
  0x1d   :  { %v37_v27 = vrot.slane %v36_v23, 1  ;;  %v43_v28 = vmax.f32 %v41_v18, %v42_v24  ;;  %v51_v29 = vrot.slane %v50_v25, 1  ;;  %v57_v30 = vmax.f32 %v55_v20, %v56_v26 }
  0x1f   :  { %v38_v32 = vmax.f32 %v36_v23, %v37_v27  ;;  %v44_v33 = vrot.slane %v43_v28, 1  ;;  %v52_v34 = vmax.f32 %v50_v25, %v51_v29  ;;  %v58_v35 = vrot.slane %v57_v30, 1 }
  0x21   :  { %v45_v36 = vmax.f32 %v43_v28, %v44_v33  ;;  %v59_v37 = vmax.f32 %v57_v30, %v58_v35 }
  0x23   :  { %v66_v39 = vcombine.low %v38_v32, %v45_v36  ;;  %v67_v40 = vcombine.low %v52_v34, %v59_v37 }
  0x25   :  { %vm70_vm1 = vcmp.eq.f32.partialorder %v23_v0, %v66_v39  ;;  %vm71_vm2 = vcmp.eq.f32.partialorder %v24_v1, %v67_v40  ;;  %v126_v1 = vunpack.c.0.s8 %v125_v56 }
  0x26   :  { %v79_v41 = vsel %vm70_vm1, %v78_v38, 4  ;;  %v80_v42 = vsel %vm71_vm2, %v78_v38, 4  ;;  %vm148_vm1 = vcmask 1045509   ;;  %vm150_vm2 = vcmask 1047559  }
  0x27   :  { %v81_v43 = vcombine.high %v79_v41, %v79_v41  ;;  %v82_v44 = vcombine.high %v80_v42, %v80_v42  ;;  %v83_v45 = vsel %vm31_vm0, %v79_v41, 2147483647  ;;  %v103_v46 = vsel %vm31_vm0, %v80_v42, 2147483647 }
  0x28   :  { %v84_v47 = vrot.slane %v83_v45, 4  ;;  %v104_v48 = vrot.slane %v103_v46, 4  ;;  %v129_v10 = vsub.s32 %v126_v1, %v256_v21 }
  0x29   :  { %v93_v49 = vsel %vm31_vm0, %v81_v43, 2147483647  ;;  %v113_v50 = vsel %vm31_vm0, %v82_v44, 2147483647  ;;  %vm146_vm0 = vcmask 1043459  }
  0x2a   :  { %vm85_vm3 = vcmp.lt.s32.totalorder %v83_v45, %v84_v47  ;;  %v94_v51 = vrot.slane %v93_v49, 4  ;;  %vm105_vm4 = vcmp.lt.s32.totalorder %v103_v46, %v104_v48  ;;  %v114_v52 = vrot.slane %v113_v50, 4 }
  0x2b   :  { %v86_v53 = vsel %vm85_vm3, %v83_v45, %v84_v47  ;;  %v106_v54 = vsel %vm105_vm4, %v103_v46, %v104_v48 }
  0x2c   :  { %v87_v57 = vrot.slane %v86_v53, 2  ;;  %vm95_vm5 = vcmp.lt.s32.totalorder %v93_v49, %v94_v51  ;;  %v107_v58 = vrot.slane %v106_v54, 2  ;;  %vm115_vm6 = vcmp.lt.s32.totalorder %v113_v50, %v114_v52 }
  0x2d   :  { %v96_v59 = vsel %vm95_vm5, %v93_v49, %v94_v51  ;;  %v116_v60 = vsel %vm115_vm6, %v113_v50, %v114_v52 }
  0x2e   :  { %vm88_vm7 = vcmp.lt.s32.totalorder %v86_v53, %v87_v57  ;;  %v97_v61 = vrot.slane %v96_v59, 2  ;;  %vm108_vm8 = vcmp.lt.s32.totalorder %v106_v54, %v107_v58  ;;  %v117_v62 = vrot.slane %v116_v60, 2 }
  0x2f   :  { %v89_v63 = vsel %vm88_vm7, %v86_v53, %v87_v57  ;;  %v109_v0 = vsel %vm108_vm8, %v106_v54, %v107_v58 }
  0x30   :  { %v90_v2 = vrot.slane %v89_v63, 1  ;;  %vm98_vm9 = vcmp.lt.s32.totalorder %v96_v59, %v97_v61  ;;  %v110_v3 = vrot.slane %v109_v0, 1  ;;  %vm118_vm10 = vcmp.lt.s32.totalorder %v116_v60, %v117_v62 }
  0x31   :  { %v99_v4 = vsel %vm98_vm9, %v96_v59, %v97_v61  ;;  %v119_v5 = vsel %vm118_vm10, %v116_v60, %v117_v62 }
  0x32   :  { %vm91_vm11 = vcmp.lt.s32.totalorder %v89_v63, %v90_v2  ;;  %v100_v6 = vrot.slane %v99_v4, 1  ;;  %vm111_vm12 = vcmp.lt.s32.totalorder %v109_v0, %v110_v3  ;;  %v120_v7 = vrot.slane %v119_v5, 1 }
  0x33   :  { %v92_v8 = vsel %vm91_vm11, %v89_v63, %v90_v2  ;;  %v112_v9 = vsel %vm111_vm12, %v109_v0, %v110_v3 }
  0x34   :  { %vm101_vm13 = vcmp.lt.s32.totalorder %v99_v4, %v100_v6  ;;  %vm121_vm14 = vcmp.lt.s32.totalorder %v119_v5, %v120_v7 }
  0x35   :  { %v102_v11 = vsel %vm101_vm13, %v99_v4, %v100_v6  ;;  %v122_v12 = vsel %vm121_vm14, %v119_v5, %v120_v7 }
  0x36   :  { %v123_v13 = vcombine.low %v92_v8, %v102_v11  ;;  %v131_v14 = vcombine.low %v112_v9, %v122_v12 }
  0x38   :  { %v130_v15 = vrot.slane %v123_v13, %v129_v10  ;;  %v138_v16 = vrot.slane %v131_v14, %v129_v10 }
  0x3a   :  { %v143_v17 = vrot.slane %v138_v16, 7 }
  0x3c   :  { %v145_v18 = vsel %vm144_vm15, %v143_v17, %v130_v15 }
  0x3d   :  { %v147_v19 = vsel %vm146_vm0, %v143_v17, %v145_v18 }
  0x3e   :  { %v149_v20 = vsel %vm148_vm1, %v143_v17, %v147_v19 }
  0x3f   :  { %v151_v22 = vsel %vm150_vm2, %v143_v17, %v149_v20 }
  0x40   :  { %152 = vst [vmem:[#allocation5] sm:$0xf] %v151_v22 }
  0x41   :  { %209 = shalt.err (!%p206_p12)
}
  0x42   :  { %s210_s24 = scalar_lea.hbm %s278_s1, 64 }
  0x43   :  { %p211_p13 = scmp.ne.s32.totalorder %s278_s1, %s210_s24  ;;  %p214_p0 = scmp.lt.u32.totalorder %s210_s24, %s278_s1 }
  0x45   :  { %p216_p1 = pnand %p214_p0, %p211_p13 }
  0x47   :  { %219 = shalt.err (!%p216_p1)
}
  0x48   :  { %162 = dma.vmem_to_hbm [thread:$0]  %s160_s20, 64, %s278_s1, [#allocation4]  }
  0x49   :  { %222 = dma.done.wait [#allocation4], 64  }
  0x4a   :  { %223 = vsyncadd [#allocation4], 4294967232 }
  0x4b   :  { %166 = vsyncpa [#allocation3], 1 }
  0x4c   :  { %167 = vsyncpa [#allocation4], 1 }

</bundles_post_ra>
